<compile_context>
chip_gen: v7x
topology: tpu7x:2x2x1
jax: 0.10.0
libtpu: 0.0.40
codegen_flags: <defaults>
</compile_context>

<pallas_src>
import math

import jax
import jax.numpy as jnp
from jax.experimental import pallas as pl
from jax.experimental.pallas import tpu as pltpu


def _round_up(x, m):
    return ((x + m - 1) // m) * m


def _vmem_bytes(shape, dtype):
    """Bytes of a 2-D array once laid out in VMEM ((sublane,128)-padded)."""
    rows, cols = shape
    itemsize = jnp.dtype(dtype).itemsize
    sublane = 32 // itemsize        # 8 rows for f32, 16 for bf16, 32 for int8
    return _round_up(rows, sublane) * _round_up(cols, 128) * itemsize


def decoder_kernel(z_ref, w1_ref, b1_ref, w2_ref, b2_ref, w3_ref, b3_ref,
                   mu_ref):
    # dec1 + ReLU  (MXU matmul, f32 accumulation; bias add / activation in f32)
    h = jnp.dot(z_ref[...], w1_ref[...], preferred_element_type=jnp.float32)
    h = jnp.maximum(h + b1_ref[...], 0.0)
    # dec2 + ReLU
    h = jnp.dot(h.astype(w2_ref.dtype), w2_ref[...],
                preferred_element_type=jnp.float32)
    h = jnp.maximum(h + b2_ref[...], 0.0)
    # dec3 + tanh — output keeps the true D columns (no lane padding), so the
    # HBM writeback is dense and the EUP only computes D tanh per row.
    mu = jnp.dot(h.astype(w3_ref.dtype), w3_ref[...],
                 preferred_element_type=jnp.float32)
    mu_ref[...] = jnp.tanh(mu + b3_ref[...]).astype(mu_ref.dtype)


def decoder_forward(Z, params, *, tile_n=2048, compute_dtype=jnp.bfloat16,
                    out_dtype=jnp.float32):
    """Returns (mu, std) matching the PyTorch Decoder.forward semantics."""
    w1, b1, w2, b2, w3, b3, log_scale = params
    N, M = Z.shape
    H = w1.shape[1]
    D = w3.shape[1]

    # --- batch tiling -------------------------------------------------------
    # Sublane multiple of the compute dtype (avoids packed-layout repacks).
    sub = 32 // jnp.dtype(compute_dtype).itemsize
    n_rounded = _round_up(N, sub)
    # Keep at least 2 grid steps when the batch allows it, so the "parallel"
    # batch axis can be sharded across both TensorCores on v7x.
    tile_cap = max(sub, _round_up(pl.cdiv(n_rounded, 2), sub))
    tile_n = max(sub, min(_round_up(tile_n, sub), tile_cap))

    # --- VMEM budget (lane/sublane-padded, incl. f32 intermediates) ---------
    vmem_cap = 48 * 2**20            # conservative: fits v7x's 64 MiB per TC
    try:
        vmem_cap = int(0.75 * pltpu.get_tpu_info().vmem_capacity_bytes)
    except Exception:
        pass

    def footprint(tn):
        # Inputs/outputs are double-buffered by the BlockSpec pipeline.
        weights = 2 * (_vmem_bytes((M, H), compute_dtype)
                       + _vmem_bytes((H, H), compute_dtype)
                       + _vmem_bytes((H, D), compute_dtype)
                       + 2 * _vmem_bytes((1, H), jnp.float32)
                       + _vmem_bytes((1, D), jnp.float32))
        io_tiles = 2 * (_vmem_bytes((tn, M), compute_dtype)
                        + _vmem_bytes((tn, D), out_dtype))
        interm = 3 * _vmem_bytes((tn, H), jnp.float32)   # h1, h2, mu (f32)
        return weights + io_tiles + interm

    while tile_n > sub and footprint(tile_n) > int(0.75 * vmem_cap):
        tile_n = max(sub, _round_up(tile_n // 2, sub))

    Np = _round_up(N, tile_n)
    Zp = Z if Np == N else jnp.pad(Z, ((0, Np - N), (0, 0)))
    grid = (Np // tile_n,)

    # Matmul operands in compute_dtype (bf16 MXU-native on all generations);
    # biases, accumulation and activations stay f32.
    Zc = Zp.astype(compute_dtype)
    w1c = w1.astype(compute_dtype)
    w2c = w2.astype(compute_dtype)
    w3c = w3.astype(compute_dtype)
    b1f = b1.astype(jnp.float32)
    b2f = b2.astype(jnp.float32)
    b3f = b3.astype(jnp.float32)

    vmem_limit = int(min(vmem_cap, max(32 * 2**20, 2 * footprint(tile_n))))

    itc = jnp.dtype(compute_dtype).itemsize
    cost = pl.CostEstimate(
        flops=2 * Np * (M * H + H * H + H * D),
        transcendentals=Np * D,
        bytes_accessed=(Np * M * itc                       # Z read
                        + (M * H + H * H + H * D) * itc    # weights
                        + (2 * H + D) * 4                  # biases
                        + Np * D * jnp.dtype(out_dtype).itemsize),  # mu write
    )

    mu_padded = pl.pallas_call(
        decoder_kernel,
        out_shape=jax.ShapeDtypeStruct((Np, D), out_dtype),
        grid=grid,
        in_specs=[
            pl.BlockSpec((tile_n, M), lambda i: (i, 0)),   # Z tile (pipelined)
            pl.BlockSpec((M, H), lambda i: (0, 0)),        # w1 (VMEM-resident)
            pl.BlockSpec((1, H), lambda i: (0, 0)),        # b1
            pl.BlockSpec((H, H), lambda i: (0, 0)),        # w2
            pl.BlockSpec((1, H), lambda i: (0, 0)),        # b2
            pl.BlockSpec((H, D), lambda i: (0, 0)),        # w3
            pl.BlockSpec((1, D), lambda i: (0, 0)),        # b3
        ],
        out_specs=pl.BlockSpec((tile_n, D), lambda i: (i, 0)),
        compiler_params=pltpu.CompilerParams(
            dimension_semantics=("parallel",),
            vmem_limit_bytes=vmem_limit,
        ),
        cost_estimate=cost,
    )(Zc, w1c, b1f, w2c, b2f, w3c, b3f)

    mu = mu_padded[:N]
    # Scalar, Z-independent: compute outside the kernel (no SMEM/scalar exp).
    std = jnp.exp(log_scale.astype(jnp.float32))
    return mu, std


def init_params(key, M, H, D):
    # Deterministic synthetic init mirroring nn.Linear shapes.
    k1, k2, k3, k4, k5, k6 = jax.random.split(key, 6)
    w1 = jax.random.normal(k1, (M, H), jnp.float32) * 0.1   # dec1: (in=M, out=H)
    b1 = jax.random.normal(k2, (1, H), jnp.float32) * 0.1
    w2 = jax.random.normal(k3, (H, H), jnp.float32) * 0.1   # dec2
    b2 = jax.random.normal(k4, (1, H), jnp.float32) * 0.1
    w3 = jax.random.normal(k5, (H, D), jnp.float32) * 0.1   # dec3
    b3 = jax.random.normal(k6, (1, D), jnp.float32) * 0.1
    log_scale = jnp.array([0.0], jnp.float32)                # nn.Parameter([0.0])
    return (w1, b1, w2, b2, w3, b3, log_scale)


def decoder_ref(Z, params):
    w1, b1, w2, b2, w3, b3, log_scale = params
    h = jnp.maximum(Z @ w1 + b1, 0.0)
    h = jnp.maximum(h @ w2 + b2, 0.0)
    mu = jnp.tanh(h @ w3 + b3)
    return mu, jnp.exp(log_scale)


if __name__ == "__main__":
    M, H, D = 8, 32, 16   # latent, hidden, output dims
    key = jax.random.PRNGKey(0)
    kz, kp = jax.random.split(key)
    params = init_params(kp, M, H, D)

    # Case 1: small batch, single grid step, f32 operands — tight check.
    N = 8
    Z = jax.random.normal(kz, (N, M), jnp.float32)
    mu, std = decoder_forward(Z, params, tile_n=8, compute_dtype=jnp.float32)
    jax.block_until_ready((mu, std))
    mu_ref, std_ref = decoder_ref(Z, params)
    assert mu.shape == (N, D) and std.shape == (1,)
    assert jnp.allclose(mu, mu_ref, atol=1e-5, rtol=1e-5)
    assert jnp.allclose(std, std_ref, atol=1e-6)

    # Case 2: multi-step grid over N with default bf16 MXU operands.
    N2 = 64
    Z2 = jax.random.normal(jax.random.PRNGKey(1), (N2, M), jnp.float32)
    mu2, std2 = decoder_forward(Z2, params)   # tile_n clamped -> 2 grid steps
    jax.block_until_ready((mu2, std2))
    mu2_ref, _ = decoder_ref(Z2, params)
    assert mu2.shape == (N2, D) and std2.shape == (1,)
    assert jnp.allclose(mu2, mu2_ref, atol=5e-2, rtol=5e-2)

    # Case 3: batch not a multiple of the tile (exercise row padding + slice).
    N3 = 37
    Z3 = jax.random.normal(jax.random.PRNGKey(2), (N3, M), jnp.float32)
    mu3, _ = decoder_forward(Z3, params, compute_dtype=jnp.bfloat16)
    jax.block_until_ready(mu3)
    mu3_ref, _ = decoder_ref(Z3, params)
    assert mu3.shape == (N3, D)
    assert jnp.allclose(mu3, mu3_ref, atol=5e-2, rtol=5e-2)

    print("KERNEL_OK")
</pallas_src>

<mosaic_0001>
module attributes {stable_mosaic.version = 11 : i64} {
  func.func @decoder_kernel(%arg0: i32, %arg1: memref<8x8xf32, #tpu.memory_space<vmem>>, %arg2: memref<8x32xf32, #tpu.memory_space<vmem>>, %arg3: memref<1x32xf32, #tpu.memory_space<vmem>>, %arg4: memref<32x32xf32, #tpu.memory_space<vmem>>, %arg5: memref<1x32xf32, #tpu.memory_space<vmem>>, %arg6: memref<32x16xf32, #tpu.memory_space<vmem>>, %arg7: memref<1x16xf32, #tpu.memory_space<vmem>>, %arg8: memref<8x16xf32, #tpu.memory_space<vmem>>) attributes {dimension_semantics = [#tpu.dimension_semantics<parallel>], iteration_bounds = array<i64: 1>, scalar_prefetch = 0 : i64, scratch_operands = 0 : i64, tpu.core_type = #tpu.core_type<tc>, window_params = [{transform_indices = @transform_0, window_bounds = array<i64: 8, 8>}, {pipeline_mode = #tpu.pipeline_mode<synchronous>, transform_indices = @transform_1, window_bounds = array<i64: 8, 32>}, {pipeline_mode = #tpu.pipeline_mode<synchronous>, transform_indices = @transform_2, window_bounds = array<i64: 1, 32>}, {pipeline_mode = #tpu.pipeline_mode<synchronous>, transform_indices = @transform_3, window_bounds = array<i64: 32, 32>}, {pipeline_mode = #tpu.pipeline_mode<synchronous>, transform_indices = @transform_4, window_bounds = array<i64: 1, 32>}, {pipeline_mode = #tpu.pipeline_mode<synchronous>, transform_indices = @transform_5, window_bounds = array<i64: 32, 16>}, {pipeline_mode = #tpu.pipeline_mode<synchronous>, transform_indices = @transform_6, window_bounds = array<i64: 1, 16>}, {transform_indices = @transform_7, window_bounds = array<i64: 8, 16>}]} {
    %c0 = arith.constant 0 : index
    %c0_0 = arith.constant 0 : index
    %0 = vector.load %arg1[%c0, %c0_0] : memref<8x8xf32, #tpu.memory_space<vmem>>, vector<8x8xf32>
    %c0_1 = arith.constant 0 : index
    %c0_2 = arith.constant 0 : index
    %1 = vector.load %arg2[%c0_1, %c0_2] : memref<8x32xf32, #tpu.memory_space<vmem>>, vector<8x32xf32>
    %cst = arith.constant dense<0.000000e+00> : vector<8x32xf32>
    %2 = tpu.matmul %0, %1, %cst {dimension_numbers = #tpu.dot_dimension_numbers<[1], [0], [0], [1], [0, 0, 1, 1], [], []>} : vector<8x8xf32>, vector<8x32xf32>, vector<8x32xf32> -> vector<8x32xf32>
    %c0_3 = arith.constant 0 : index
    %c0_4 = arith.constant 0 : index
    %3 = vector.load %arg3[%c0_3, %c0_4] : memref<1x32xf32, #tpu.memory_space<vmem>>, vector<1x32xf32>
    %4 = vector.broadcast %3 : vector<1x32xf32> to vector<8x32xf32>
    %5 = arith.addf %2, %4 : vector<8x32xf32>
    %cst_5 = arith.constant 0.000000e+00 : f32
    %6 = vector.broadcast %cst_5 : f32 to vector<8x32xf32>
    %7 = arith.maximumf %5, %6 : vector<8x32xf32>
    %c0_6 = arith.constant 0 : index
    %c0_7 = arith.constant 0 : index
    %8 = vector.load %arg4[%c0_6, %c0_7] : memref<32x32xf32, #tpu.memory_space<vmem>>, vector<32x32xf32>
    %cst_8 = arith.constant dense<0.000000e+00> : vector<8x32xf32>
    %9 = tpu.matmul %7, %8, %cst_8 {dimension_numbers = #tpu.dot_dimension_numbers<[1], [0], [0], [1], [0, 0, 1, 1], [], []>} : vector<8x32xf32>, vector<32x32xf32>, vector<8x32xf32> -> vector<8x32xf32>
    %c0_9 = arith.constant 0 : index
    %c0_10 = arith.constant 0 : index
    %10 = vector.load %arg5[%c0_9, %c0_10] : memref<1x32xf32, #tpu.memory_space<vmem>>, vector<1x32xf32>
    %11 = vector.broadcast %10 : vector<1x32xf32> to vector<8x32xf32>
    %12 = arith.addf %9, %11 : vector<8x32xf32>
    %cst_11 = arith.constant 0.000000e+00 : f32
    %13 = vector.broadcast %cst_11 : f32 to vector<8x32xf32>
    %14 = arith.maximumf %12, %13 : vector<8x32xf32>
    %c0_12 = arith.constant 0 : index
    %c0_13 = arith.constant 0 : index
    %15 = vector.load %arg6[%c0_12, %c0_13] : memref<32x16xf32, #tpu.memory_space<vmem>>, vector<32x16xf32>
    %cst_14 = arith.constant dense<0.000000e+00> : vector<8x16xf32>
    %16 = tpu.matmul %14, %15, %cst_14 {dimension_numbers = #tpu.dot_dimension_numbers<[1], [0], [0], [1], [0, 0, 1, 1], [], []>} : vector<8x32xf32>, vector<32x16xf32>, vector<8x16xf32> -> vector<8x16xf32>
    %c0_15 = arith.constant 0 : index
    %c0_16 = arith.constant 0 : index
    %17 = vector.load %arg7[%c0_15, %c0_16] : memref<1x16xf32, #tpu.memory_space<vmem>>, vector<1x16xf32>
    %18 = vector.broadcast %17 : vector<1x16xf32> to vector<8x16xf32>
    %19 = arith.addf %16, %18 : vector<8x16xf32>
    %20 = math.tanh %19 : vector<8x16xf32>
    %c0_17 = arith.constant 0 : index
    %c0_18 = arith.constant 0 : index
    %21 = vector.load %arg8[%c0_17, %c0_18] : memref<8x16xf32, #tpu.memory_space<vmem>>, vector<8x16xf32>
    tpu.vector_store %arg8[%c0_17, %c0_18], %20 {strides = array<i32>} : memref<8x16xf32, #tpu.memory_space<vmem>>, vector<8x16xf32>,
    return
  }
  func.func @transform_0(%arg0: i32) -> (i32, i32) {
    %c0_i32 = arith.constant 0 : i32
    %c0_i32_0 = arith.constant 0 : i32
    return %arg0, %c0_i32 : i32, i32
  }
  func.func @transform_1(%arg0: i32) -> (i32, i32) {
    %c0_i32 = arith.constant 0 : i32
    %c0_i32_0 = arith.constant 0 : i32
    %c0_i32_1 = arith.constant 0 : i32
    return %c0_i32, %c0_i32_0 : i32, i32
  }
  func.func @transform_2(%arg0: i32) -> (i32, i32) {
    %c0_i32 = arith.constant 0 : i32
    %c0_i32_0 = arith.constant 0 : i32
    %c0_i32_1 = arith.constant 0 : i32
    return %c0_i32, %c0_i32_0 : i32, i32
  }
  func.func @transform_3(%arg0: i32) -> (i32, i32) {
    %c0_i32 = arith.constant 0 : i32
    %c0_i32_0 = arith.constant 0 : i32
    %c0_i32_1 = arith.constant 0 : i32
    return %c0_i32, %c0_i32_0 : i32, i32
  }
  func.func @transform_4(%arg0: i32) -> (i32, i32) {
    %c0_i32 = arith.constant 0 : i32
    %c0_i32_0 = arith.constant 0 : i32
    %c0_i32_1 = arith.constant 0 : i32
    return %c0_i32, %c0_i32_0 : i32, i32
  }
  func.func @transform_5(%arg0: i32) -> (i32, i32) {
    %c0_i32 = arith.constant 0 : i32
    %c0_i32_0 = arith.constant 0 : i32
    %c0_i32_1 = arith.constant 0 : i32
    return %c0_i32, %c0_i32_0 : i32, i32
  }
  func.func @transform_6(%arg0: i32) -> (i32, i32) {
    %c0_i32 = arith.constant 0 : i32
    %c0_i32_0 = arith.constant 0 : i32
    %c0_i32_1 = arith.constant 0 : i32
    return %c0_i32, %c0_i32_0 : i32, i32
  }
  func.func @transform_7(%arg0: i32) -> (i32, i32) {
    %c0_i32 = arith.constant 0 : i32
    %c0_i32_0 = arith.constant 0 : i32
    return %arg0, %c0_i32 : i32, i32
  }
}

</mosaic_0001>

<bundles_post_ra>
// kernel: tpu_custom_call.1
= control target key start
LH: loop header
LB: loop body
LE: loop exit
PB: predicated region body
PF: predicated region fallthrough
CT: control target
= control target key end

     0   :  { %vm36_vm0 = vcmask 64512   ;;  %v385_v2 = vmov 0.0   ;;  %vm386_vm1 = vmmov 0   ;;  %v387_v5 = vmov 0.0|0.0   ;;  %s480_s0 = inlined_call_operand.vmem [shape: f32[8,8], index: 0, kind: input, shape index: {}]   ;;  %s481_s1 = inlined_call_operand.vmem [shape: f32[8,32], index: 1, kind: input, shape index: {}]   ;;  %s482_s2 = inlined_call_operand.vmem [shape: f32[1,32], index: 2, kind: input, shape index: {}]   ;;  %s483_s3 = inlined_call_operand.vmem [shape: f32[32,32], index: 3, kind: input, shape index: {}]   ;;  %s484_s4 = inlined_call_operand.vmem [shape: f32[1,32], index: 4, kind: input, shape index: {}]   ;;  %s485_s5 = inlined_call_operand.vmem [shape: f32[32,16], index: 5, kind: input, shape index: {}]   ;;  %s486_s6 = inlined_call_operand.vmem [shape: f32[1,16], index: 6, kind: input, shape index: {}]   ;;  %s487_s7 = inlined_call_operand.hbm [shape: f32[8,16], index: 7, kind: output, shape index: {}]  }
   0x1   :  { %v28_v0 = vld [vmem:[%s481_s1] sm:$0xff]  ;;  %316 = vmatprep.subr.mxu0 %v385_v2  ;;  %318 = vmatprep.mubr.msk.f32.mxu0 %vm386_vm1, %v385_v2  ;;  %v112_v4 = vld [vmem:[%s483_s3 + $0x8] sm:$0xff] }
   0x2   :  { %v27_v1 = vld [vmem:[%s480_s0] sm:$0xff]  ;;  %317 = vmatpush3.msra.mxu0 %v28_v0  ;;  %343 = vmatprep.subr.bf16.mxu1 %v387_v5 }
   0x3   :  { %v111_v3 = vld [vmem:[%s483_s3] sm:$0xff] }
   0x4   :  { %v344_v6 = vpack.c.bf16 %v112_v4, %v111_v3 }
   0x5   :  { %12 = vsyncpa [#allocation3], 0  ;;  %319 = vmatmul.mubr.msk.f32.vlgmr.msra.gmra.mrb[0].mxu0 %vm36_vm0, %v27_v1  ;;  %329 = vmatprep.mubr.msk.f32.mxu1 %vm386_vm1, %v385_v2  ;;  %v113_v7 = vld [vmem:[%s483_s3 + $0x10] sm:$0xff]  ;;  %v114_v8 = vld [vmem:[%s483_s3 + $0x18] sm:$0xff]  ;;  %vm122_vm2 = vcmask 261120   ;;  %vm282_vm3 = vcmask 130048  }
   0x6   :  { %345 = vmatpush3.bf16.msra.mxu1 %v344_v6  ;;  %349 = vmatprep.subr.bf16.mxu0 %v387_v5  ;;  %v347_v9 = vpack.c.bf16 %v114_v8, %v113_v7  ;;  %v197_v10 = vld [vmem:[%s485_s5] sm:$0xff]  ;;  %v198_v11 = vld [vmem:[%s485_s5 + $0x8] sm:$0xff]  ;;  %v199_v18 = vld [vmem:[%s485_s5 + $0x10] sm:$0xff] }
   0x7   :  { %346 = vmatprep.subr.bf16.mxu1 %v387_v5  ;;  %340 = vmatprep.mubr.msk.f32.mxu0 %vm386_vm1, %v385_v2  ;;  %v350_v12 = vpack.c.bf16 %v198_v11, %v197_v10  ;;  %v298_v13 = vld [vmem:[%s482_s2] ss:$0 sm:$0xff]  ;;  %v200_v19 = vld [vmem:[%s485_s5 + $0x18] sm:$0xff]  ;;  %s388_s5 = smov [#allocation2]  }
   0x8   :  { %v353_v20 = vpack.c.bf16 %v200_v19, %v199_v18  ;;  %v300_v21 = vld [vmem:[%s484_s4] ss:$0 sm:$0xff]  ;;  %s290_s23 = sshll.u32 %s388_s5, 4  ;;  %s291_s23 = int_to_ptr.vmem [resolvable:$true] %s290_s23 }
   0x9   :  { %351 = vmatpush3.bf16.msra.mxu0 %v350_v12  ;;  %v302_v26 = vld [vmem:[%s486_s6] ss:$0 sm:$0xff]  ;;  %s361_s4 = scalar_lea.vmem %s291_s23, 128  ;;  %p366_p1 = scmp.lt.s32.totalorder %s291_s23, %s291_s23 }
   0xa   :  { %348 = vmatpush3.bf16.msra.mxu1 %v347_v9  ;;  %352 = vmatprep.subr.bf16.mxu0 %v387_v5  ;;  %p362_p0 = scmp.ne.s32.totalorder %s291_s23, %s361_s4  ;;  %p367_p2 = scmp.lt.s32.totalorder %s361_s4, %s361_s4 }
   0xc   :  { %p368_p3 = por %p367_p2, %p366_p1 }
   0xd   :  { %354 = vmatpush3.bf16.msra.mxu0 %v353_v20 }
   0xe   :  { %p369_p4 = pnand %p368_p3, %p362_p0 }
  0xd8   :  { %v106_v14 = vpop.f32.mrb[0].mxu0 }
  0xd9   :  { %v107_v15 = vadd.f32 %v298_v13, %v106_v14  ;;  %v320_v16 = vpop.f32.mrb[1].mxu0 }
  0xdb   :  { %v110_v17 = vmax.f32 %v107_v15, 0.0 }
  0xdd   :  { %330 = vmatmul.mubr.msk.f32.vlgmr.msra.gmra.mrb[0].mxu1 %vm122_vm2, %v110_v17 }
 0x1b0   :  { %v192_v22 = vpop.f32.mrb[0].mxu1 }
 0x1b1   :  { %v193_v23 = vadd.f32 %v300_v21, %v192_v22  ;;  %v331_v24 = vpop.f32.mrb[1].mxu1 }
 0x1b3   :  { %v196_v25 = vmax.f32 %v193_v23, 0.0 }
 0x1b5   :  { %341 = vmatmul.mubr.msk.f32.vlgmr.msra.gmra.mrb[2].mxu0 %vm122_vm2, %v196_v25 }
 0x288   :  { %v277_v27 = vpop.f32.mrb[2].mxu0 }
 0x289   :  { %v278_v28 = vadd.f32 %v302_v26, %v277_v27  ;;  %v342_v29 = vpop.f32.mrb[3].mxu0 }
 0x28b   :  { %359 = vtanh.f32 %v278_v28 }
 0x295   :  { %v360_v30 = vpop.eup %359 }
 0x296   :  { %283 = vst.msk [vmem:[#allocation2] sm:$0xff] %vm282_vm3, %v360_v30 }
 0x297   :  { %372 = shalt.err (!%p369_p4)
}
 0x298   :  { %s373_s6 = scalar_lea.hbm %s487_s7, 128 }
 0x299   :  { %p374_p5 = scmp.ne.s32.totalorder %s487_s7, %s373_s6  ;;  %p377_p6 = scmp.lt.u32.totalorder %s373_s6, %s487_s7 }
 0x29b   :  { %p379_p7 = pnand %p377_p6, %p374_p5 }
 0x29d   :  { %382 = shalt.err (!%p379_p7)
}
 0x29e   :  { %293 = dma.vmem_to_hbm [thread:$0]  %s291_s23, 128, %s487_s7, [#allocation3]  }
 0x29f   :  { %383 = dma.done.wait [#allocation3], 128  }
 0x2a0   :  { %384 = vsyncadd [#allocation3], 4294967168 }
 0x2a1   :  { %297 = vsyncpa [#allocation3], 1 }

</bundles_post_ra>
